<compile_context>
chip_gen: v7x
topology: tpu7x:2x2x1
jax: 0.10.0
libtpu: 0.0.40
codegen_flags: <defaults>
</compile_context>

<pallas_src>
import functools
import inspect
import math

import jax
import jax.numpy as jnp
from jax.experimental import pallas as pl
from jax.experimental.pallas import tpu as pltpu


# ---------------------------------------------------------------------------
# hardware config
# ---------------------------------------------------------------------------
def _tpu_generation():
    try:
        kind = jax.devices()[0].device_kind.lower()
    except Exception:
        return 6
    for gen in (7, 6, 5, 4, 3):
        if (f"v{gen}" in kind) or (f"tpu{gen}" in kind):
            return gen
    return 6


def _vmem_capacity_bytes(gen):
    try:
        info = pltpu.get_tpu_info()
        cap = int(getattr(info, "vmem_capacity_bytes", 0) or 0)
        if cap > 0:
            return cap
    except Exception:
        pass
    return (64 if gen >= 7 else 128) * 1024 * 1024


def _hw_config():
    gen = _tpu_generation()
    cap = _vmem_capacity_bytes(gen)
    return {
        "gen": gen,
        "vmem_limit": int(cap * 0.75),      # scoped VMEM limit (leave headroom)
        "fused_budget": int(cap * 0.60),    # budget for the fully-fused path
        "lane_align": 256 if gen >= 6 else 128,   # 2x256x256 MXU on v6e/v7x
        "max_tm": 256 if gen >= 7 else 512,
        "tn_pref": 256,
        "tk_pref": 512 if gen >= 7 else 1024,
        "multi_core": gen >= 7,             # v7x: 2 TensorCores per chip
    }


def _supports_single_buffer():
    if not hasattr(pl, "Buffered"):
        return False
    try:
        return "pipeline_mode" in inspect.signature(pl.BlockSpec).parameters
    except (ValueError, TypeError):
        return False


_HAS_SINGLE_BUFFER = _supports_single_buffer()


# ---------------------------------------------------------------------------
# helpers
# ---------------------------------------------------------------------------
def _round_up(x, m):
    return ((x + m - 1) // m) * m


def _pad_feature(d, lane_align):
    # keep tiny dims at 128 lanes; use 256 alignment on v6e/v7x for wide dims
    if d <= 128:
        return _round_up(d, 128)
    return _round_up(d, lane_align)


def _choose_row_tile(m, *, sublane, max_tm, want_multi_step):
    """Return (padded_M, tile_m) minimizing padding waste; optionally split for 2 TCs."""
    if m <= max_tm:
        tm = _round_up(m, sublane)
        mp = tm
    else:
        cands = [c for c in (512, 256, 128, 64) if c <= max_tm] or [max_tm]
        best_tm, best_key = None, None
        for c in cands:
            waste = _round_up(m, c) - m
            key = (waste, -c)            # minimize padding waste, prefer larger tile
            if best_key is None or key < best_key:
                best_key, best_tm = key, c
        tm = best_tm
        mp = _round_up(m, tm)
    if want_multi_step and (mp // tm) < 2 and tm >= 2 * sublane:
        tm = _round_up(tm // 2, sublane)   # give both TensorCores a grid step
        mp = _round_up(m, tm)
    return mp, tm


def _pick_tile(padded_dim, pref):
    """Largest tile in {pref, 512, 256, 128} dividing padded_dim."""
    for cand in (pref, 512, 256, 128):
        if cand <= padded_dim and padded_dim % cand == 0:
            return cand
    return padded_dim


def _gelu(x, approximate):
    if approximate:
        return jax.nn.gelu(x, approximate=True)       # EUP tanh path
    # exact erf-based GELU, matching torch.nn.functional.gelu default
    return 0.5 * x * (1.0 + jax.lax.erf(x * (1.0 / math.sqrt(2.0))))


def _fused_vmem_bytes(tm, dims_p, w_bytes, weight_buffers):
    """Conservative VMEM estimate for the fully-fused kernel."""
    total = 0
    for i in range(len(dims_p) - 1):
        total += dims_p[i] * dims_p[i + 1] * w_bytes * weight_buffers   # weights
        total += dims_p[i + 1] * 4 * weight_buffers                     # f32 bias row
    total += tm * dims_p[0] * w_bytes * 2    # x tile (double-buffered)
    total += tm * dims_p[-1] * 4 * 2         # out tile (double-buffered)
    total += tm * max(dims_p) * 4 * 3        # f32 intermediate-activation headroom
    return total


# ---------------------------------------------------------------------------
# kernels
# ---------------------------------------------------------------------------
def _fused_mlp_kernel(*refs, n_layers, gelu_approximate):
    """Whole MLP stack on one (tm, D) row-tile; weights stay VMEM-resident."""
    x_ref = refs[0]
    o_ref = refs[-1]
    h = x_ref[...]
    for li in range(n_layers):
        w_ref = refs[1 + 2 * li]
        b_ref = refs[2 + 2 * li]
        h = jnp.dot(h.astype(w_ref.dtype), w_ref[...],
                    preferred_element_type=jnp.float32) + b_ref[...]
        if li != n_layers - 1:
            h = _gelu(h, gelu_approximate)
    o_ref[...] = h.astype(o_ref.dtype)


def _linear_tiled_kernel(x_ref, w_ref, b_ref, o_ref, acc_ref, *,
                         apply_gelu, gelu_approximate):
    """K-tiled Linear: f32 accumulator, bias/GELU applied once in finalize."""
    k = pl.program_id(2)

    @pl.when(k == 0)
    def _():
        acc_ref[...] = jnp.zeros_like(acc_ref)

    acc_ref[...] += jnp.dot(x_ref[...].astype(w_ref.dtype), w_ref[...],
                            preferred_element_type=jnp.float32)

    @pl.when(k == pl.num_programs(2) - 1)
    def _():
        acc = acc_ref[...] + b_ref[...]
        if apply_gelu:
            acc = _gelu(acc, gelu_approximate)
        o_ref[...] = acc.astype(o_ref.dtype)


# ---------------------------------------------------------------------------
# pallas_call wrappers
# ---------------------------------------------------------------------------
def _weight_spec(shape, single_buffer):
    # grid-invariant (VMEM-resident) block: single-buffer it when supported
    if single_buffer:
        return pl.BlockSpec(shape, lambda i: (0, 0), pipeline_mode=pl.Buffered(1))
    return pl.BlockSpec(shape, lambda i: (0, 0))


def _mlp_fused_call(x_p, params_p, tm, out_dtype, cfg, single_buffer_weights,
                    gelu_approximate):
    mp, k0p = x_p.shape
    n_layers = len(params_p)
    n_last = params_p[-1][0].shape[1]

    in_specs = [pl.BlockSpec((tm, k0p), lambda i: (i, 0))]
    args = [x_p]
    for (w_p, b_p) in params_p:
        kp, np_ = w_p.shape
        in_specs.append(_weight_spec((kp, np_), single_buffer_weights))  # weight
        in_specs.append(_weight_spec((1, np_), single_buffer_weights))   # bias row
        args.extend([w_p, b_p])

    kernel = functools.partial(_fused_mlp_kernel, n_layers=n_layers,
                               gelu_approximate=gelu_approximate)
    return pl.pallas_call(
        kernel,
        out_shape=jax.ShapeDtypeStruct((mp, n_last), out_dtype),
        grid_spec=pltpu.PrefetchScalarGridSpec(
            num_scalar_prefetch=0,
            grid=(mp // tm,),
            in_specs=in_specs,
            out_specs=pl.BlockSpec((tm, n_last), lambda i: (i, 0)),
        ),
        compiler_params=pltpu.CompilerParams(
            dimension_semantics=("parallel",),
            vmem_limit_bytes=cfg["vmem_limit"],
        ),
    )(*args)


def pallas_linear_tiled(x, w, b2, *, apply_gelu, tm, out_dtype, cfg,
                        gelu_approximate):
    """x: (Mp, Kp), w: (Kp, Np), b2: (1, Np). All dims already padded/aligned."""
    mp, kp = x.shape
    _, np_ = w.shape
    tn = _pick_tile(np_, cfg["tn_pref"])
    tk = _pick_tile(kp, cfg["tk_pref"])

    kernel = functools.partial(_linear_tiled_kernel, apply_gelu=apply_gelu,
                               gelu_approximate=gelu_approximate)
    return pl.pallas_call(
        kernel,
        out_shape=jax.ShapeDtypeStruct((mp, np_), out_dtype),
        grid_spec=pltpu.PrefetchScalarGridSpec(
            num_scalar_prefetch=0,
            grid=(mp // tm, np_ // tn, kp // tk),
            in_specs=[
                pl.BlockSpec((tm, tk), lambda i, j, k: (i, k)),
                pl.BlockSpec((tk, tn), lambda i, j, k: (k, j)),
                pl.BlockSpec((1, tn), lambda i, j, k: (0, j)),
            ],
            out_specs=pl.BlockSpec((tm, tn), lambda i, j, k: (i, j)),
            scratch_shapes=[pltpu.VMEM((tm, tn), jnp.float32)],
        ),
        compiler_params=pltpu.CompilerParams(
            dimension_semantics=("parallel", "parallel", "arbitrary"),
            vmem_limit_bytes=cfg["vmem_limit"],
        ),
    )(x, w, b2)


# ---------------------------------------------------------------------------
# module-level forward
# ---------------------------------------------------------------------------
def init_mlp_params(key, dims):
    """Deterministic init mimicking nn.Linear (uniform(-1/sqrt(fan_in), +...))."""
    params = []
    for i in range(len(dims) - 1):
        key, kw, kb = jax.random.split(key, 3)
        fan_in, fan_out = dims[i], dims[i + 1]
        bound = 1.0 / math.sqrt(fan_in)
        # stored as (in, out) so the kernel computes x @ w (== x @ W_pt.T)
        w = jax.random.uniform(kw, (fan_in, fan_out), jnp.float32, -bound, bound)
        b = jax.random.uniform(kb, (fan_out,), jnp.float32, -bound, bound)
        params.append((w, b))
    return params


def mlp_forward(x, params, *, force_per_layer=False, mxu_dtype=jnp.bfloat16,
                gelu_approximate=False):
    """x: (B, S, D_in) -> (B, S, D_out). GELU (+ dropout=identity) after every
    layer but the last.

    mxu_dtype=jnp.bfloat16 (default) feeds the MXU bf16 operands with f32
    accumulation (2-4x on v6e/v7x, half the DMA bytes).  Pass mxu_dtype=None
    for exact f32 / torch parity.
    """
    B, S, d_in = x.shape
    d_out = params[-1][0].shape[1]
    n_layers = len(params)
    orig_dtype = x.dtype
    cfg = _hw_config()

    low_precision = mxu_dtype is not None and jnp.dtype(mxu_dtype).itemsize == 2
    sublane = 16 if low_precision else 8          # bf16 packs 16 rows per vreg
    M = B * S
    mp, tm = _choose_row_tile(M, sublane=sublane, max_tm=cfg["max_tm"],
                              want_multi_step=cfg["multi_core"])

    # Pad every feature dim to a lane-dense multiple (128, or 256 on v6e/v7x).
    dims = [d_in] + [w.shape[1] for (w, _) in params]
    dims_p = [_pad_feature(d, cfg["lane_align"]) for d in dims]

    x2 = x.reshape(M, d_in)
    x_p = jnp.pad(x2, ((0, mp - M), (0, dims_p[0] - d_in)))
    if mxu_dtype is not None:
        x_p = x_p.astype(mxu_dtype)

    params_p = []
    for li, (w, b) in enumerate(params):
        w_p = jnp.pad(w, ((0, dims_p[li] - w.shape[0]),
                          (0, dims_p[li + 1] - w.shape[1])))
        b_p = jnp.pad(b, (0, dims_p[li + 1] - b.shape[0])).reshape(1, dims_p[li + 1])
        if mxu_dtype is not None:
            w_p = w_p.astype(mxu_dtype)
        # bias stays f32: added to the f32 accumulator, negligible footprint
        params_p.append((w_p, b_p.astype(jnp.float32)))

    w_bytes = jnp.dtype(mxu_dtype).itemsize if mxu_dtype is not None else 4
    weight_buffers = 1 if _HAS_SINGLE_BUFFER else 2
    use_fused = (not force_per_layer) and (
        _fused_vmem_bytes(tm, dims_p, w_bytes, weight_buffers) <= cfg["fused_budget"])

    if use_fused:
        if _HAS_SINGLE_BUFFER:
            try:
                out_p = _mlp_fused_call(x_p, params_p, tm, orig_dtype, cfg, True,
                                        gelu_approximate)
            except Exception:
                # pl.Buffered(1) rejected by this Pallas build: double-buffer instead
                out_p = _mlp_fused_call(x_p, params_p, tm, orig_dtype, cfg, False,
                                        gelu_approximate)
        else:
            out_p = _mlp_fused_call(x_p, params_p, tm, orig_dtype, cfg, False,
                                    gelu_approximate)
    else:
        # TODO(synk): replace the per-layer fallback with a single activation-
        # resident pallas_call that streams oversized weights via
        # pltpu.emit_pipeline (removes the HBM activation round-trip).
        h = x_p
        for li, (w_p, b_p) in enumerate(params_p):
            last = (li == n_layers - 1)
            layer_out_dtype = orig_dtype if (last or mxu_dtype is None) else mxu_dtype
            h = pallas_linear_tiled(h, w_p, b_p, apply_gelu=not last, tm=tm,
                                    out_dtype=layer_out_dtype, cfg=cfg,
                                    gelu_approximate=gelu_approximate)
        out_p = h

    return out_p[:M, :d_out].reshape(B, S, d_out).astype(orig_dtype)


def mlp_reference(x, params):
    """Plain-JAX f32 reference for correctness sanity checks."""
    h = x
    n_layers = len(params)
    for idx, (w, b) in enumerate(params):
        h = h @ w + b
        if idx != n_layers - 1:
            h = jax.nn.gelu(h, approximate=False)
    return h


if __name__ == "__main__":
    key = jax.random.PRNGKey(0)
    dims = [32, 64, 32]          # MLP([32, 64, 32])
    B, S = 2, 8                  # batch=2, seq=8

    k_x, k_p = jax.random.split(key)
    x = jax.random.normal(k_x, (B, S, dims[0]), jnp.float32)
    params = init_mlp_params(k_p, dims)
    ref = mlp_reference(x, params)

    # Default path: bf16 MXU operands, fully-fused single pallas_call.
    out_bf16 = jax.block_until_ready(mlp_forward(x, params))
    assert out_bf16.shape == (B, S, dims[-1])
    assert jnp.allclose(out_bf16, ref, atol=1e-1, rtol=1e-1), "bf16 fused mismatch"

    # Exact-f32 path (torch-erf parity), fused.
    out_f32 = jax.block_until_ready(mlp_forward(x, params, mxu_dtype=None))
    assert jnp.allclose(out_f32, ref, atol=1e-5, rtol=1e-5), "f32 fused mismatch"

    # Per-layer M/N/K-tiled fallback, f32 (coverage).
    out_tiled = jax.block_until_ready(
        mlp_forward(x, params, mxu_dtype=None, force_per_layer=True))
    assert jnp.allclose(out_tiled, ref, atol=1e-5, rtol=1e-5), "f32 tiled mismatch"

    # Per-layer fallback, bf16 (coverage, looser tolerance).
    out_tiled_bf16 = jax.block_until_ready(
        mlp_forward(x, params, force_per_layer=True))
    assert jnp.allclose(out_tiled_bf16, ref, atol=1e-1, rtol=1e-1), "bf16 tiled mismatch"

    print("KERNEL_OK")
</pallas_src>

<mosaic_0001>
module attributes {stable_mosaic.version = 11 : i64} {
  func.func @_fused_mlp_kernel(%arg0: i32, %arg1: memref<16x128xbf16, #tpu.memory_space<vmem>>, %arg2: memref<128x128xbf16, #tpu.memory_space<vmem>>, %arg3: memref<1x128xf32, #tpu.memory_space<vmem>>, %arg4: memref<128x128xbf16, #tpu.memory_space<vmem>>, %arg5: memref<1x128xf32, #tpu.memory_space<vmem>>, %arg6: memref<16x128xf32, #tpu.memory_space<vmem>>) attributes {dimension_semantics = [#tpu.dimension_semantics<parallel>], iteration_bounds = array<i64: 1>, scalar_prefetch = 0 : i64, scratch_operands = 0 : i64, tpu.core_type = #tpu.core_type<tc>, window_params = [{transform_indices = @transform_0, window_bounds = array<i64: 16, 128>}, {pipeline_mode = #tpu.pipeline_mode<synchronous>, transform_indices = @transform_1, window_bounds = array<i64: 128, 128>}, {pipeline_mode = #tpu.pipeline_mode<synchronous>, transform_indices = @transform_2, window_bounds = array<i64: 1, 128>}, {pipeline_mode = #tpu.pipeline_mode<synchronous>, transform_indices = @transform_3, window_bounds = array<i64: 128, 128>}, {pipeline_mode = #tpu.pipeline_mode<synchronous>, transform_indices = @transform_4, window_bounds = array<i64: 1, 128>}, {transform_indices = @transform_5, window_bounds = array<i64: 16, 128>}]} {
    %c0 = arith.constant 0 : index
    %c0_0 = arith.constant 0 : index
    %0 = vector.load %arg1[%c0, %c0_0] : memref<16x128xbf16, #tpu.memory_space<vmem>>, vector<16x128xbf16>
    %c0_1 = arith.constant 0 : index
    %c0_2 = arith.constant 0 : index
    %1 = vector.load %arg2[%c0_1, %c0_2] : memref<128x128xbf16, #tpu.memory_space<vmem>>, vector<128x128xbf16>
    %cst = arith.constant dense<0.000000e+00> : vector<16x128xf32>
    %2 = tpu.matmul %0, %1, %cst {dimension_numbers = #tpu.dot_dimension_numbers<[1], [0], [0], [1], [0, 0, 1, 1], [], []>} : vector<16x128xbf16>, vector<128x128xbf16>, vector<16x128xf32> -> vector<16x128xf32>
    %c0_3 = arith.constant 0 : index
    %c0_4 = arith.constant 0 : index
    %3 = vector.load %arg3[%c0_3, %c0_4] : memref<1x128xf32, #tpu.memory_space<vmem>>, vector<1x128xf32>
    %4 = vector.broadcast %3 : vector<1x128xf32> to vector<16x128xf32>
    %5 = arith.addf %2, %4 : vector<16x128xf32>
    %cst_5 = arith.constant 5.000000e-01 : f32
    %6 = vector.broadcast %cst_5 : f32 to vector<16x128xf32>
    %7 = arith.mulf %6, %5 : vector<16x128xf32>
    %cst_6 = arith.constant 0.707106769 : f32
    %8 = vector.broadcast %cst_6 : f32 to vector<16x128xf32>
    %9 = arith.mulf %5, %8 : vector<16x128xf32>
    %10 = math.erf %9 : vector<16x128xf32>
    %cst_7 = arith.constant 1.000000e+00 : f32
    %11 = vector.broadcast %cst_7 : f32 to vector<16x128xf32>
    %12 = arith.addf %11, %10 : vector<16x128xf32>
    %13 = arith.mulf %7, %12 : vector<16x128xf32>
    %14 = arith.truncf %13 : vector<16x128xf32> to vector<16x128xbf16>
    %c0_8 = arith.constant 0 : index
    %c0_9 = arith.constant 0 : index
    %15 = vector.load %arg4[%c0_8, %c0_9] : memref<128x128xbf16, #tpu.memory_space<vmem>>, vector<128x128xbf16>
    %cst_10 = arith.constant dense<0.000000e+00> : vector<16x128xf32>
    %16 = tpu.matmul %14, %15, %cst_10 {dimension_numbers = #tpu.dot_dimension_numbers<[1], [0], [0], [1], [0, 0, 1, 1], [], []>} : vector<16x128xbf16>, vector<128x128xbf16>, vector<16x128xf32> -> vector<16x128xf32>
    %c0_11 = arith.constant 0 : index
    %c0_12 = arith.constant 0 : index
    %17 = vector.load %arg5[%c0_11, %c0_12] : memref<1x128xf32, #tpu.memory_space<vmem>>, vector<1x128xf32>
    %18 = vector.broadcast %17 : vector<1x128xf32> to vector<16x128xf32>
    %19 = arith.addf %16, %18 : vector<16x128xf32>
    %c0_13 = arith.constant 0 : index
    %c0_14 = arith.constant 0 : index
    %20 = vector.load %arg6[%c0_13, %c0_14] : memref<16x128xf32, #tpu.memory_space<vmem>>, vector<16x128xf32>
    tpu.vector_store %arg6[%c0_13, %c0_14], %19 {strides = array<i32>} : memref<16x128xf32, #tpu.memory_space<vmem>>, vector<16x128xf32>,
    return
  }
  func.func @transform_0(%arg0: i32) -> (i32, i32) {
    %c0_i32 = arith.constant 0 : i32
    %c0_i32_0 = arith.constant 0 : i32
    return %arg0, %c0_i32 : i32, i32
  }
  func.func @transform_1(%arg0: i32) -> (i32, i32) {
    %c0_i32 = arith.constant 0 : i32
    %c0_i32_0 = arith.constant 0 : i32
    %c0_i32_1 = arith.constant 0 : i32
    return %c0_i32, %c0_i32_0 : i32, i32
  }
  func.func @transform_2(%arg0: i32) -> (i32, i32) {
    %c0_i32 = arith.constant 0 : i32
    %c0_i32_0 = arith.constant 0 : i32
    %c0_i32_1 = arith.constant 0 : i32
    return %c0_i32, %c0_i32_0 : i32, i32
  }
  func.func @transform_3(%arg0: i32) -> (i32, i32) {
    %c0_i32 = arith.constant 0 : i32
    %c0_i32_0 = arith.constant 0 : i32
    %c0_i32_1 = arith.constant 0 : i32
    return %c0_i32, %c0_i32_0 : i32, i32
  }
  func.func @transform_4(%arg0: i32) -> (i32, i32) {
    %c0_i32 = arith.constant 0 : i32
    %c0_i32_0 = arith.constant 0 : i32
    %c0_i32_1 = arith.constant 0 : i32
    return %c0_i32, %c0_i32_0 : i32, i32
  }
  func.func @transform_5(%arg0: i32) -> (i32, i32) {
    %c0_i32 = arith.constant 0 : i32
    %c0_i32_0 = arith.constant 0 : i32
    return %arg0, %c0_i32 : i32, i32
  }
}

module attributes {stable_mosaic.version = 11 : i64} {
  func.func @_fused_mlp_kernel(%arg0: i32, %arg1: memref<16x128xbf16, #tpu.memory_space<vmem>>, %arg2: memref<128x128xbf16, #tpu.memory_space<vmem>>, %arg3: memref<1x128xf32, #tpu.memory_space<vmem>>, %arg4: memref<128x128xbf16, #tpu.memory_space<vmem>>, %arg5: memref<1x128xf32, #tpu.memory_space<vmem>>, %arg6: memref<16x128xf32, #tpu.memory_space<vmem>>) attributes {dimension_semantics = [#tpu.dimension_semantics<parallel>], iteration_bounds = array<i64: 1>, scalar_prefetch = 0 : i64, scratch_operands = 0 : i64, tpu.core_type = #tpu.core_type<tc>, window_params = [{transform_indices = @transform_0, window_bounds = array<i64: 16, 128>}, {pipeline_mode = #tpu.pipeline_mode<synchronous>, transform_indices = @transform_1, window_bounds = array<i64: 128, 128>}, {pipeline_mode = #tpu.pipeline_mode<synchronous>, transform_indices = @transform_2, window_bounds = array<i64: 1, 128>}, {pipeline_mode = #tpu.pipeline_mode<synchronous>, transform_indices = @transform_3, window_bounds = array<i64: 128, 128>}, {pipeline_mode = #tpu.pipeline_mode<synchronous>, transform_indices = @transform_4, window_bounds = array<i64: 1, 128>}, {transform_indices = @transform_5, window_bounds = array<i64: 16, 128>}]} {
    %c0 = arith.constant 0 : index
    %c0_0 = arith.constant 0 : index
    %0 = vector.load %arg1[%c0, %c0_0] : memref<16x128xbf16, #tpu.memory_space<vmem>>, vector<16x128xbf16>
    %c0_1 = arith.constant 0 : index
    %c0_2 = arith.constant 0 : index
    %1 = vector.load %arg2[%c0_1, %c0_2] : memref<128x128xbf16, #tpu.memory_space<vmem>>, vector<128x128xbf16>
    %cst = arith.constant dense<0.000000e+00> : vector<16x128xf32>
    %2 = tpu.matmul %0, %1, %cst {dimension_numbers = #tpu.dot_dimension_numbers<[1], [0], [0], [1], [0, 0, 1, 1], [], []>} : vector<16x128xbf16>, vector<128x128xbf16>, vector<16x128xf32> -> vector<16x128xf32>
    %c0_3 = arith.constant 0 : index
    %c0_4 = arith.constant 0 : index
    %3 = vector.load %arg3[%c0_3, %c0_4] : memref<1x128xf32, #tpu.memory_space<vmem>>, vector<1x128xf32>
    %4 = vector.broadcast %3 : vector<1x128xf32> to vector<16x128xf32>
    %5 = arith.addf %2, %4 : vector<16x128xf32>
    %cst_5 = arith.constant 5.000000e-01 : f32
    %6 = vector.broadcast %cst_5 : f32 to vector<16x128xf32>
    %7 = arith.mulf %6, %5 : vector<16x128xf32>
    %cst_6 = arith.constant 0.707106769 : f32
    %8 = vector.broadcast %cst_6 : f32 to vector<16x128xf32>
    %9 = arith.mulf %5, %8 : vector<16x128xf32>
    %10 = math.erf %9 : vector<16x128xf32>
    %cst_7 = arith.constant 1.000000e+00 : f32
    %11 = vector.broadcast %cst_7 : f32 to vector<16x128xf32>
    %12 = arith.addf %11, %10 : vector<16x128xf32>
    %13 = arith.mulf %7, %12 : vector<16x128xf32>
    %14 = arith.truncf %13 : vector<16x128xf32> to vector<16x128xbf16>
    %c0_8 = arith.constant 0 : index
    %c0_9 = arith.constant 0 : index
    %15 = vector.load %arg4[%c0_8, %c0_9] : memref<128x128xbf16, #tpu.memory_space<vmem>>, vector<128x128xbf16>
    %cst_10 = arith.constant dense<0.000000e+00> : vector<16x128xf32>
    %16 = tpu.matmul %14, %15, %cst_10 {dimension_numbers = #tpu.dot_dimension_numbers<[1], [0], [0], [1], [0, 0, 1, 1], [], []>} : vector<16x128xbf16>, vector<128x128xbf16>, vector<16x128xf32> -> vector<16x128xf32>
    %c0_11 = arith.constant 0 : index
    %c0_12 = arith.constant 0 : index
    %17 = vector.load %arg5[%c0_11, %c0_12] : memref<1x128xf32, #tpu.memory_space<vmem>>, vector<1x128xf32>
    %18 = vector.broadcast %17 : vector<1x128xf32> to vector<16x128xf32>
    %19 = arith.addf %16, %18 : vector<16x128xf32>
    %c0_13 = arith.constant 0 : index
    %c0_14 = arith.constant 0 : index
    %20 = vector.load %arg6[%c0_13, %c0_14] : memref<16x128xf32, #tpu.memory_space<vmem>>, vector<16x128xf32>
    tpu.vector_store %arg6[%c0_13, %c0_14], %19 {strides = array<i32>} : memref<16x128xf32, #tpu.memory_space<vmem>>, vector<16x128xf32>,
    return
  }
  func.func @transform_0(%arg0: i32) -> (i32, i32) {
    %c0_i32 = arith.constant 0 : i32
    %c0_i32_0 = arith.constant 0 : i32
    return %arg0, %c0_i32 : i32, i32
  }
  func.func @transform_1(%arg0: i32) -> (i32, i32) {
    %c0_i32 = arith.constant 0 : i32
    %c0_i32_0 = arith.constant 0 : i32
    %c0_i32_1 = arith.constant 0 : i32
    return %c0_i32, %c0_i32_0 : i32, i32
  }
  func.func @transform_2(%arg0: i32) -> (i32, i32) {
    %c0_i32 = arith.constant 0 : i32
    %c0_i32_0 = arith.constant 0 : i32
    %c0_i32_1 = arith.constant 0 : i32
    return %c0_i32, %c0_i32_0 : i32, i32
  }
  func.func @transform_3(%arg0: i32) -> (i32, i32) {
    %c0_i32 = arith.constant 0 : i32
    %c0_i32_0 = arith.constant 0 : i32
    %c0_i32_1 = arith.constant 0 : i32
    return %c0_i32, %c0_i32_0 : i32, i32
  }
  func.func @transform_4(%arg0: i32) -> (i32, i32) {
    %c0_i32 = arith.constant 0 : i32
    %c0_i32_0 = arith.constant 0 : i32
    %c0_i32_1 = arith.constant 0 : i32
    return %c0_i32, %c0_i32_0 : i32, i32
  }
  func.func @transform_5(%arg0: i32) -> (i32, i32) {
    %c0_i32 = arith.constant 0 : i32
    %c0_i32_0 = arith.constant 0 : i32
    return %arg0, %c0_i32 : i32, i32
  }
}

</mosaic_0001>

<bundles_post_ra>
// kernel: tpu_custom_call.1
= control target key start
LH: loop header
LB: loop body
LE: loop exit
PB: predicated region body
PF: predicated region fallthrough
CT: control target
= control target key end

     0   :  { %10 = vsyncpa [#allocation3], 0  ;;  %s730_s0 = inlined_call_operand.hbm [shape: bf16[16,128], index: 0, kind: input, shape index: {}]   ;;  %s731_s1 = inlined_call_operand.hbm [shape: bf16[128,128], index: 1, kind: input, shape index: {}]   ;;  %s732_s2 = inlined_call_operand.hbm [shape: f32[1,128], index: 2, kind: input, shape index: {}]   ;;  %s733_s3 = inlined_call_operand.hbm [shape: bf16[128,128], index: 3, kind: input, shape index: {}]   ;;  %s734_s4 = inlined_call_operand.hbm [shape: f32[1,128], index: 4, kind: input, shape index: {}]   ;;  %s735_s5 = inlined_call_operand.hbm [shape: f32[16,128], index: 5, kind: output, shape index: {}]  }
   0x1   :  { %11 = vsyncpa [#allocation6], 0 }
   0x2   :  { %12 = vsyncpa [#allocation9], 0 }
   0x3   :  { %13 = vsyncpa [#allocation4], 0  ;;  %s600_s18 = smov [#allocation5]   ;;  %s601_s20 = smov [#allocation8]  }
   0x4   :  { %s31_s19 = sshll.u32 %s600_s18, 4  ;;  %s53_s21 = sshll.u32 %s601_s20, 4  ;;  %s32_s19 = int_to_ptr.vmem [resolvable:$true] %s31_s19  ;;  %s642_s21 = int_to_ptr.vmem [resolvable:$true] %s53_s21 }
   0x5   :  { %s460_s24 = scalar_lea.hbm %s731_s1, 1024 }
   0x6   :  { %p461_p0 = scmp.ne.s32.totalorder %s731_s1, %s460_s24  ;;  %p464_p1 = scmp.lt.u32.totalorder %s460_s24, %s731_s1 }
   0x8   :  { %p466_p2 = pnand %p464_p1, %p461_p0 }
   0xa   :  { %469 = shalt.err (!%p466_p2)
}
   0xb   :  { %s470_s29 = scalar_lea.vmem %s32_s19, 1024  ;;  %p475_p4 = scmp.lt.s32.totalorder %s32_s19, %s32_s19 }
   0xc   :  { %p471_p3 = scmp.ne.s32.totalorder %s32_s19, %s470_s29  ;;  %p476_p5 = scmp.lt.s32.totalorder %s470_s29, %s470_s29 }
   0xe   :  { %p477_p6 = por %p476_p5, %p475_p4 }
  0x10   :  { %p478_p7 = pnand %p477_p6, %p471_p3 }
  0x12   :  { %481 = shalt.err (!%p478_p7)
}
  0x13   :  { %s602_s30 = smov 64   ;;  %s603_s6 = smov 4  }
  0x14   :  { %37 = dma.hbm_to_vmem [thread:$0]  %s731_s1, 1024, %s32_s19, [#allocation6], %s602_s30, %s602_s30, %s603_s6  }
  0x15   :  { %s482_s11 = scalar_lea.hbm %s733_s3, 1024 }
  0x16   :  { %p483_p8 = scmp.ne.s32.totalorder %s733_s3, %s482_s11  ;;  %p486_p9 = scmp.lt.u32.totalorder %s482_s11, %s733_s3 }
  0x18   :  { %p488_p10 = pnand %p486_p9, %p483_p8 }
  0x1a   :  { %491 = shalt.err (!%p488_p10)
}
  0x1b   :  { %s492_s16 = scalar_lea.vmem %s642_s21, 1024  ;;  %p497_p12 = scmp.lt.s32.totalorder %s642_s21, %s642_s21 }
  0x1c   :  { %p493_p11 = scmp.ne.s32.totalorder %s642_s21, %s492_s16  ;;  %p498_p13 = scmp.lt.s32.totalorder %s492_s16, %s492_s16 }
  0x1e   :  { %p499_p0 = por %p498_p13, %p497_p12 }
  0x20   :  { %p500_p1 = pnand %p499_p0, %p493_p11 }
  0x22   :  { %503 = shalt.err (!%p500_p1)
}
  0x23   :  { %59 = dma.hbm_to_vmem [thread:$0]  %s733_s3, 1024, %s642_s21, [#allocation9], %s602_s30, %s602_s30, %s603_s6  }
  0x24   :  { %s604_s18 = smov [#allocation2]   ;;  %s605_s20 = smov [#allocation7]  }
  0x25   :  { %s19_s19 = sshll.u32 %s604_s18, 4  ;;  %s44_s22 = sshll.u32 %s605_s20, 4  ;;  %s20_s19 = int_to_ptr.vmem [resolvable:$true] %s19_s19  ;;  %s45_s22 = int_to_ptr.vmem [resolvable:$true] %s44_s22 }
  0x26   :  { %s504_s25 = scalar_lea.hbm %s730_s0, 128 }
  0x27   :  { %p505_p2 = scmp.ne.s32.totalorder %s730_s0, %s504_s25  ;;  %p508_p3 = scmp.lt.u32.totalorder %s504_s25, %s730_s0 }
  0x29   :  { %p510_p4 = pnand %p508_p3, %p505_p2 }
  0x2b   :  { %513 = shalt.err (!%p510_p4)
}
  0x2c   :  { %s514_s3 = scalar_lea.vmem %s20_s19, 128  ;;  %p519_p6 = scmp.lt.s32.totalorder %s20_s19, %s20_s19 }
  0x2d   :  { %p515_p5 = scmp.ne.s32.totalorder %s20_s19, %s514_s3  ;;  %p520_p7 = scmp.lt.s32.totalorder %s514_s3, %s514_s3 }
  0x2f   :  { %p521_p8 = por %p520_p7, %p519_p6 }
  0x31   :  { %p522_p9 = pnand %p521_p8, %p515_p5 }
  0x33   :  { %525 = shalt.err (!%p522_p9)
}
  0x34   :  { %25 = dma.hbm_to_vmem [thread:$0]  %s730_s0, 128, %s20_s19, [#allocation3], %s602_s30, %s602_s30, %s603_s6  }
  0x35   :  { %s526_s10 = scalar_lea.hbm %s732_s2, 16 }
  0x36   :  { %p527_p10 = scmp.ne.s32.totalorder %s732_s2, %s526_s10  ;;  %p530_p11 = scmp.lt.u32.totalorder %s526_s10, %s732_s2 }
  0x38   :  { %p532_p12 = pnand %p530_p11, %p527_p10 }
  0x3a   :  { %535 = shalt.err (!%p532_p12)
}
  0x3b   :  { %s536_s15 = scalar_lea.vmem %s45_s22, 16  ;;  %s540_s16 = scalar_lea.vmem %s45_s22, 32 }
  0x3c   :  { %p537_p13 = scmp.ne.s32.totalorder %s45_s22, %s536_s15  ;;  %p541_p0 = scmp.lt.s32.totalorder %s45_s22, %s45_s22 }
  0x3d   :  { %p542_p1 = scmp.lt.s32.totalorder %s540_s16, %s536_s15 }
  0x3f   :  { %p543_p2 = por %p542_p1, %p541_p0 }
  0x41   :  { %p544_p3 = pnand %p543_p2, %p537_p13 }
  0x43   :  { %547 = shalt.err (!%p544_p3)
}
  0x44   :  { %47 = dma.hbm_to_vmem [thread:$0]  %s732_s2, 16, %s45_s22, [#allocation6]  }
  0x45   :  { %s606_s6 = smov [#allocation10]   ;;  %s548_s19 = scalar_lea.hbm %s734_s4, 16 }
  0x46   :  { %s66_s1 = sshll.u32 %s606_s6, 4  ;;  %p549_p4 = scmp.ne.s32.totalorder %s734_s4, %s548_s19  ;;  %s67_s1 = int_to_ptr.vmem [resolvable:$true] %s66_s1 }
  0x47   :  { %p552_p5 = scmp.lt.u32.totalorder %s548_s19, %s734_s4 }
  0x49   :  { %p554_p6 = pnand %p552_p5, %p549_p4 }
  0x4b   :  { %557 = shalt.err (!%p554_p6)
}
  0x4c   :  { %s558_s26 = scalar_lea.vmem %s67_s1, 16  ;;  %s562_s2 = scalar_lea.vmem %s67_s1, 32 }
  0x4d   :  { %p559_p7 = scmp.ne.s32.totalorder %s67_s1, %s558_s26  ;;  %p563_p8 = scmp.lt.s32.totalorder %s67_s1, %s67_s1 }
  0x4e   :  { %p564_p9 = scmp.lt.s32.totalorder %s562_s2, %s558_s26 }
  0x50   :  { %p565_p10 = por %p564_p9, %p563_p8 }
  0x52   :  { %p566_p11 = pnand %p565_p10, %p559_p7 }
  0x54   :  { %569 = shalt.err (!%p566_p11)
}
  0x55   :  { %69 = dma.hbm_to_vmem [thread:$0]  %s734_s4, 16, %s67_s1, [#allocation9]  }
  0x56   :  { %592 = dma.done.wait [#allocation3], 128  }
  0x57   :  { %593 = vsyncadd [#allocation3], 4294967168 }
  0x58   :  { %594 = dma.done.wait [#allocation6], 1040  }
  0x59   :  { %595 = vsyncadd [#allocation6], 4294966256 }
  0x5a   :  { %596 = dma.done.wait [#allocation9], 1040  }
  0x5b   :  { %597 = vsyncadd [#allocation9], 4294966256  ;;  %v607_v0 = vmov 0.0   ;;  %vm608_vm0 = vmmov 0   ;;  %v439_v1 = vld [vmem:[#allocation5] sm:$0xff]   ;;  %v440_v2 = vld [vmem:[#allocation5 + $0x8] sm:$0xff]  }
  0x5c   :  { %387 = vmatprep.subr.bf16.mxu0 %v607_v0  ;;  %403 = vmatprep.mubr.msk.bf16.mxu0 %vm608_vm0, %v607_v0  ;;  %v441_v3 = vld [vmem:[#allocation5 + $0x10] sm:$0xff]   ;;  %v448_v4 = vld [vmem:[#allocation8] sm:$0xff]   ;;  %v442_v5 = vld [vmem:[#allocation5 + $0x18] sm:$0xff]   ;;  %s609_s4 = smov [#allocation11]  }
  0x5d   :  { %407 = vmatprep.subr.bf16.mxu1 %v607_v0  ;;  %423 = vmatprep.mubr.msk.bf16.mxu1 %vm608_vm0, %v607_v0  ;;  %v449_v6 = vld [vmem:[#allocation8 + $0x8] sm:$0xff]   ;;  %v443_v7 = vld [vmem:[#allocation5 + $0x20] sm:$0xff]   ;;  %v446_v10 = vld [vmem:[#allocation5 + $0x38] sm:$0xff]   ;;  %s336_s28 = sshll.u32 %s609_s4, 4  ;;  %s337_s28 = int_to_ptr.vmem [resolvable:$true] %s336_s28 }
  0x5e   :  { %388 = vmatpush3.bf16.msra.mxu0 %v439_v1  ;;  %408 = vmatpush3.bf16.msra.mxu1 %v448_v4  ;;  %v444_v8 = vld [vmem:[#allocation5 + $0x28] sm:$0xff]   ;;  %v445_v9 = vld [vmem:[#allocation5 + $0x30] sm:$0xff]   ;;  %v447_v11 = vld [vmem:[#allocation2] sm:$0xff]   ;;  %s570_s29 = scalar_lea.vmem %s337_s28, 256  ;;  %p575_p13 = scmp.lt.s32.totalorder %s337_s28, %s337_s28 }
  0x5f   :  { %389 = vmatprep.subr.bf16.mxu0 %v607_v0  ;;  %409 = vmatprep.subr.bf16.mxu1 %v607_v0  ;;  %v450_v12 = vld [vmem:[#allocation8 + $0x10] sm:$0xff]   ;;  %v451_v13 = vld [vmem:[#allocation8 + $0x18] sm:$0xff]   ;;  %v452_v14 = vld [vmem:[#allocation8 + $0x20] sm:$0xff]   ;;  %p571_p12 = scmp.ne.s32.totalorder %s337_s28, %s570_s29  ;;  %p576_p0 = scmp.lt.s32.totalorder %s570_s29, %s570_s29 }
  0x60   :  { %v453_v15 = vld [vmem:[#allocation8 + $0x28] sm:$0xff]   ;;  %v454_v16 = vld [vmem:[#allocation8 + $0x30] sm:$0xff]   ;;  %v455_v17 = vld [vmem:[#allocation8 + $0x38] sm:$0xff]  }
  0x61   :  { %v350_v18 = vld [vmem:[#allocation7] ss:$0 sm:$0xff]  ;;  %v360_v36 = vld [vmem:[#allocation10] ss:$0 sm:$0xff]  ;;  %p577_p1 = por %p576_p0, %p575_p13 }
  0x62   :  { %390 = vmatpush3.bf16.msra.mxu0 %v440_v2  ;;  %410 = vmatpush3.bf16.msra.mxu1 %v449_v6 }
  0x63   :  { %391 = vmatprep.subr.bf16.mxu0 %v607_v0  ;;  %411 = vmatprep.subr.bf16.mxu1 %v607_v0  ;;  %p578_p2 = pnand %p577_p1, %p571_p12 }
  0x66   :  { %392 = vmatpush3.bf16.msra.mxu0 %v441_v3  ;;  %412 = vmatpush3.bf16.msra.mxu1 %v450_v12 }
  0x67   :  { %393 = vmatprep.subr.bf16.mxu0 %v607_v0  ;;  %413 = vmatprep.subr.bf16.mxu1 %v607_v0 }
  0x6a   :  { %394 = vmatpush3.bf16.msra.mxu0 %v442_v5  ;;  %414 = vmatpush3.bf16.msra.mxu1 %v451_v13 }
  0x6b   :  { %395 = vmatprep.subr.bf16.mxu0 %v607_v0  ;;  %415 = vmatprep.subr.bf16.mxu1 %v607_v0 }
  0x6e   :  { %396 = vmatpush3.bf16.msra.mxu0 %v443_v7  ;;  %416 = vmatpush3.bf16.msra.mxu1 %v452_v14 }
  0x6f   :  { %397 = vmatprep.subr.bf16.mxu0 %v607_v0  ;;  %417 = vmatprep.subr.bf16.mxu1 %v607_v0 }
  0x72   :  { %398 = vmatpush3.bf16.msra.mxu0 %v444_v8  ;;  %418 = vmatpush3.bf16.msra.mxu1 %v453_v15 }
  0x73   :  { %399 = vmatprep.subr.bf16.mxu0 %v607_v0  ;;  %419 = vmatprep.subr.bf16.mxu1 %v607_v0 }
  0x76   :  { %400 = vmatpush3.bf16.msra.mxu0 %v445_v9  ;;  %420 = vmatpush3.bf16.msra.mxu1 %v454_v16 }
  0x77   :  { %401 = vmatprep.subr.bf16.mxu0 %v607_v0  ;;  %421 = vmatprep.subr.bf16.mxu1 %v607_v0 }
  0x7a   :  { %402 = vmatpush3.bf16.msra.mxu0 %v446_v10  ;;  %422 = vmatpush3.bf16.msra.mxu1 %v455_v17 }
  0x7d   :  { %404 = vmatmul.mubr.bf16.vlgmr.msra.gmra.mrb[0].mxu0 %v447_v11 }
 0x150   :  { %v199_v19 = vpop.f32.mrb[0].mxu0 }
 0x151   :  { %v200_v20 = vadd.f32 %v350_v18, %v199_v19  ;;  %v405_v21 = vpop.f32.mrb[1].mxu0 }
 0x152   :  { %v202_v22 = vpop.f32.mrb[2].mxu0 }
 0x153   :  { %v208_v23 = vmul.f32 0.70710677, %v200_v20  ;;  %v203_v24 = vadd.f32 %v350_v18, %v202_v22  ;;  %v406_v25 = vpop.f32.mrb[3].mxu0  ;;  %v206_v30 = vmul.f32 0.5, %v200_v20 }
 0x155   :  { %456 = verf.f32 %v208_v23  ;;  %v209_v26 = vmul.f32 0.70710677, %v203_v24  ;;  %v207_v31 = vmul.f32 0.5, %v203_v24 }
 0x157   :  { %458 = verf.f32 %v209_v26 }
 0x15f   :  { %v457_v27 = vpop.eup %456 }
 0x160   :  { %v212_v28 = vadd.f32 1.0, %v457_v27 }
 0x161   :  { %v459_v29 = vpop.eup %458 }
 0x162   :  { %v213_v32 = vadd.f32 1.0, %v459_v29  ;;  %v214_v33 = vmul.f32 %v212_v28, %v206_v30 }
 0x164   :  { %v215_v34 = vmul.f32 %v213_v32, %v207_v31 }
 0x166   :  { %v216_v35 = vpack.c.bf16 %v215_v34, %v214_v33 }
 0x168   :  { %424 = vmatmul.mubr.bf16.vlgmr.msra.gmra.mrb[0].mxu1 %v216_v35 }
 0x23b   :  { %v322_v37 = vpop.f32.mrb[0].mxu1 }
 0x23c   :  { %v323_v38 = vadd.f32 %v360_v36, %v322_v37  ;;  %v425_v39 = vpop.f32.mrb[1].mxu1 }
 0x23d   :  { %v325_v40 = vpop.f32.mrb[2].mxu1 }
 0x23e   :  { %329 = vst [vmem:[#allocation11] sm:$0xff] %v323_v38  ;;  %v326_v41 = vadd.f32 %v360_v36, %v325_v40  ;;  %v426_v42 = vpop.f32.mrb[3].mxu1 }
 0x240   :  { %330 = vst [vmem:[#allocation11 + $0x8] sm:$0xff] %v326_v41 }
 0x241   :  { %581 = shalt.err (!%p578_p2)
}
 0x242   :  { %s582_s7 = scalar_lea.hbm %s735_s5, 256 }
 0x243   :  { %p583_p3 = scmp.ne.s32.totalorder %s735_s5, %s582_s7  ;;  %p586_p4 = scmp.lt.u32.totalorder %s582_s7, %s735_s5 }
 0x245   :  { %p588_p5 = pnand %p586_p4, %p583_p3 }
 0x247   :  { %591 = shalt.err (!%p588_p5)
}
 0x248   :  { %s610_s12 = smov 128   ;;  %s611_s13 = smov 8  }
 0x249   :  { %342 = dma.vmem_to_hbm [thread:$0]  %s337_s28, 256, %s735_s5, [#allocation4], %s610_s12, %s610_s12, %s611_s13  }
 0x24a   :  { %598 = dma.done.wait [#allocation4], 256  }
 0x24b   :  { %599 = vsyncadd [#allocation4], 4294967040 }
 0x24c   :  { %346 = vsyncpa [#allocation3], 1 }
 0x24d   :  { %347 = vsyncpa [#allocation6], 1 }
 0x24e   :  { %348 = vsyncpa [#allocation9], 1 }
 0x24f   :  { %349 = vsyncpa [#allocation4], 1 }

// kernel: tpu_custom_call.1
= control target key start
LH: loop header
LB: loop body
LE: loop exit
PB: predicated region body
PF: predicated region fallthrough
CT: control target
= control target key end

     0   :  { %10 = vsyncpa [#allocation3], 0  ;;  %s730_s0 = inlined_call_operand.hbm [shape: bf16[16,128], index: 0, kind: input, shape index: {}]   ;;  %s731_s1 = inlined_call_operand.hbm [shape: bf16[128,128], index: 1, kind: input, shape index: {}]   ;;  %s732_s2 = inlined_call_operand.hbm [shape: f32[1,128], index: 2, kind: input, shape index: {}]   ;;  %s733_s3 = inlined_call_operand.hbm [shape: bf16[128,128], index: 3, kind: input, shape index: {}]   ;;  %s734_s4 = inlined_call_operand.hbm [shape: f32[1,128], index: 4, kind: input, shape index: {}]   ;;  %s735_s5 = inlined_call_operand.hbm [shape: f32[16,128], index: 5, kind: output, shape index: {}]  }
   0x1   :  { %11 = vsyncpa [#allocation6], 0 }
   0x2   :  { %12 = vsyncpa [#allocation9], 0 }
   0x3   :  { %13 = vsyncpa [#allocation4], 0  ;;  %s600_s18 = smov [#allocation5]   ;;  %s601_s20 = smov [#allocation8]  }
   0x4   :  { %s31_s19 = sshll.u32 %s600_s18, 4  ;;  %s53_s21 = sshll.u32 %s601_s20, 4  ;;  %s32_s19 = int_to_ptr.vmem [resolvable:$true] %s31_s19  ;;  %s642_s21 = int_to_ptr.vmem [resolvable:$true] %s53_s21 }
   0x5   :  { %s460_s24 = scalar_lea.hbm %s731_s1, 1024 }
   0x6   :  { %p461_p0 = scmp.ne.s32.totalorder %s731_s1, %s460_s24  ;;  %p464_p1 = scmp.lt.u32.totalorder %s460_s24, %s731_s1 }
   0x8   :  { %p466_p2 = pnand %p464_p1, %p461_p0 }
   0xa   :  { %469 = shalt.err (!%p466_p2)
}
   0xb   :  { %s470_s29 = scalar_lea.vmem %s32_s19, 1024  ;;  %p475_p4 = scmp.lt.s32.totalorder %s32_s19, %s32_s19 }
   0xc   :  { %p471_p3 = scmp.ne.s32.totalorder %s32_s19, %s470_s29  ;;  %p476_p5 = scmp.lt.s32.totalorder %s470_s29, %s470_s29 }
   0xe   :  { %p477_p6 = por %p476_p5, %p475_p4 }
  0x10   :  { %p478_p7 = pnand %p477_p6, %p471_p3 }
  0x12   :  { %481 = shalt.err (!%p478_p7)
}
  0x13   :  { %s602_s30 = smov 64   ;;  %s603_s6 = smov 4  }
  0x14   :  { %37 = dma.hbm_to_vmem [thread:$0]  %s731_s1, 1024, %s32_s19, [#allocation6], %s602_s30, %s602_s30, %s603_s6  }
  0x15   :  { %s482_s11 = scalar_lea.hbm %s733_s3, 1024 }
  0x16   :  { %p483_p8 = scmp.ne.s32.totalorder %s733_s3, %s482_s11  ;;  %p486_p9 = scmp.lt.u32.totalorder %s482_s11, %s733_s3 }
  0x18   :  { %p488_p10 = pnand %p486_p9, %p483_p8 }
  0x1a   :  { %491 = shalt.err (!%p488_p10)
}
  0x1b   :  { %s492_s16 = scalar_lea.vmem %s642_s21, 1024  ;;  %p497_p12 = scmp.lt.s32.totalorder %s642_s21, %s642_s21 }
  0x1c   :  { %p493_p11 = scmp.ne.s32.totalorder %s642_s21, %s492_s16  ;;  %p498_p13 = scmp.lt.s32.totalorder %s492_s16, %s492_s16 }
  0x1e   :  { %p499_p0 = por %p498_p13, %p497_p12 }
  0x20   :  { %p500_p1 = pnand %p499_p0, %p493_p11 }
  0x22   :  { %503 = shalt.err (!%p500_p1)
}
  0x23   :  { %59 = dma.hbm_to_vmem [thread:$0]  %s733_s3, 1024, %s642_s21, [#allocation9], %s602_s30, %s602_s30, %s603_s6  }
  0x24   :  { %s604_s18 = smov [#allocation2]   ;;  %s605_s20 = smov [#allocation7]  }
  0x25   :  { %s19_s19 = sshll.u32 %s604_s18, 4  ;;  %s44_s22 = sshll.u32 %s605_s20, 4  ;;  %s20_s19 = int_to_ptr.vmem [resolvable:$true] %s19_s19  ;;  %s45_s22 = int_to_ptr.vmem [resolvable:$true] %s44_s22 }
  0x26   :  { %s504_s25 = scalar_lea.hbm %s730_s0, 128 }
  0x27   :  { %p505_p2 = scmp.ne.s32.totalorder %s730_s0, %s504_s25  ;;  %p508_p3 = scmp.lt.u32.totalorder %s504_s25, %s730_s0 }
  0x29   :  { %p510_p4 = pnand %p508_p3, %p505_p2 }
  0x2b   :  { %513 = shalt.err (!%p510_p4)
}
  0x2c   :  { %s514_s3 = scalar_lea.vmem %s20_s19, 128  ;;  %p519_p6 = scmp.lt.s32.totalorder %s20_s19, %s20_s19 }
  0x2d   :  { %p515_p5 = scmp.ne.s32.totalorder %s20_s19, %s514_s3  ;;  %p520_p7 = scmp.lt.s32.totalorder %s514_s3, %s514_s3 }
  0x2f   :  { %p521_p8 = por %p520_p7, %p519_p6 }
  0x31   :  { %p522_p9 = pnand %p521_p8, %p515_p5 }
  0x33   :  { %525 = shalt.err (!%p522_p9)
}
  0x34   :  { %25 = dma.hbm_to_vmem [thread:$0]  %s730_s0, 128, %s20_s19, [#allocation3], %s602_s30, %s602_s30, %s603_s6  }
  0x35   :  { %s526_s10 = scalar_lea.hbm %s732_s2, 16 }
  0x36   :  { %p527_p10 = scmp.ne.s32.totalorder %s732_s2, %s526_s10  ;;  %p530_p11 = scmp.lt.u32.totalorder %s526_s10, %s732_s2 }
  0x38   :  { %p532_p12 = pnand %p530_p11, %p527_p10 }
  0x3a   :  { %535 = shalt.err (!%p532_p12)
}
  0x3b   :  { %s536_s15 = scalar_lea.vmem %s45_s22, 16  ;;  %s540_s16 = scalar_lea.vmem %s45_s22, 32 }
  0x3c   :  { %p537_p13 = scmp.ne.s32.totalorder %s45_s22, %s536_s15  ;;  %p541_p0 = scmp.lt.s32.totalorder %s45_s22, %s45_s22 }
  0x3d   :  { %p542_p1 = scmp.lt.s32.totalorder %s540_s16, %s536_s15 }
  0x3f   :  { %p543_p2 = por %p542_p1, %p541_p0 }
  0x41   :  { %p544_p3 = pnand %p543_p2, %p537_p13 }
  0x43   :  { %547 = shalt.err (!%p544_p3)
}
  0x44   :  { %47 = dma.hbm_to_vmem [thread:$0]  %s732_s2, 16, %s45_s22, [#allocation6]  }
  0x45   :  { %s606_s6 = smov [#allocation10]   ;;  %s548_s19 = scalar_lea.hbm %s734_s4, 16 }
  0x46   :  { %s66_s1 = sshll.u32 %s606_s6, 4  ;;  %p549_p4 = scmp.ne.s32.totalorder %s734_s4, %s548_s19  ;;  %s67_s1 = int_to_ptr.vmem [resolvable:$true] %s66_s1 }
  0x47   :  { %p552_p5 = scmp.lt.u32.totalorder %s548_s19, %s734_s4 }
  0x49   :  { %p554_p6 = pnand %p552_p5, %p549_p4 }
  0x4b   :  { %557 = shalt.err (!%p554_p6)
}
  0x4c   :  { %s558_s26 = scalar_lea.vmem %s67_s1, 16  ;;  %s562_s2 = scalar_lea.vmem %s67_s1, 32 }
  0x4d   :  { %p559_p7 = scmp.ne.s32.totalorder %s67_s1, %s558_s26  ;;  %p563_p8 = scmp.lt.s32.totalorder %s67_s1, %s67_s1 }
  0x4e   :  { %p564_p9 = scmp.lt.s32.totalorder %s562_s2, %s558_s26 }
  0x50   :  { %p565_p10 = por %p564_p9, %p563_p8 }
  0x52   :  { %p566_p11 = pnand %p565_p10, %p559_p7 }
  0x54   :  { %569 = shalt.err (!%p566_p11)
}
  0x55   :  { %69 = dma.hbm_to_vmem [thread:$0]  %s734_s4, 16, %s67_s1, [#allocation9]  }
  0x56   :  { %592 = dma.done.wait [#allocation3], 128  }
  0x57   :  { %593 = vsyncadd [#allocation3], 4294967168 }
  0x58   :  { %594 = dma.done.wait [#allocation6], 1040  }
  0x59   :  { %595 = vsyncadd [#allocation6], 4294966256 }
  0x5a   :  { %596 = dma.done.wait [#allocation9], 1040  }
  0x5b   :  { %597 = vsyncadd [#allocation9], 4294966256  ;;  %v607_v0 = vmov 0.0   ;;  %vm608_vm0 = vmmov 0   ;;  %v439_v1 = vld [vmem:[#allocation5] sm:$0xff]   ;;  %v440_v2 = vld [vmem:[#allocation5 + $0x8] sm:$0xff]  }
  0x5c   :  { %387 = vmatprep.subr.bf16.mxu0 %v607_v0  ;;  %403 = vmatprep.mubr.msk.bf16.mxu0 %vm608_vm0, %v607_v0  ;;  %v441_v3 = vld [vmem:[#allocation5 + $0x10] sm:$0xff]   ;;  %v448_v4 = vld [vmem:[#allocation8] sm:$0xff]   ;;  %v442_v5 = vld [vmem:[#allocation5 + $0x18] sm:$0xff]   ;;  %s609_s4 = smov [#allocation11]  }
  0x5d   :  { %407 = vmatprep.subr.bf16.mxu1 %v607_v0  ;;  %423 = vmatprep.mubr.msk.bf16.mxu1 %vm608_vm0, %v607_v0  ;;  %v449_v6 = vld [vmem:[#allocation8 + $0x8] sm:$0xff]   ;;  %v443_v7 = vld [vmem:[#allocation5 + $0x20] sm:$0xff]   ;;  %v446_v10 = vld [vmem:[#allocation5 + $0x38] sm:$0xff]   ;;  %s336_s28 = sshll.u32 %s609_s4, 4  ;;  %s337_s28 = int_to_ptr.vmem [resolvable:$true] %s336_s28 }
  0x5e   :  { %388 = vmatpush3.bf16.msra.mxu0 %v439_v1  ;;  %408 = vmatpush3.bf16.msra.mxu1 %v448_v4  ;;  %v444_v8 = vld [vmem:[#allocation5 + $0x28] sm:$0xff]   ;;  %v445_v9 = vld [vmem:[#allocation5 + $0x30] sm:$0xff]   ;;  %v447_v11 = vld [vmem:[#allocation2] sm:$0xff]   ;;  %s570_s29 = scalar_lea.vmem %s337_s28, 256  ;;  %p575_p13 = scmp.lt.s32.totalorder %s337_s28, %s337_s28 }
  0x5f   :  { %389 = vmatprep.subr.bf16.mxu0 %v607_v0  ;;  %409 = vmatprep.subr.bf16.mxu1 %v607_v0  ;;  %v450_v12 = vld [vmem:[#allocation8 + $0x10] sm:$0xff]   ;;  %v451_v13 = vld [vmem:[#allocation8 + $0x18] sm:$0xff]   ;;  %v452_v14 = vld [vmem:[#allocation8 + $0x20] sm:$0xff]   ;;  %p571_p12 = scmp.ne.s32.totalorder %s337_s28, %s570_s29  ;;  %p576_p0 = scmp.lt.s32.totalorder %s570_s29, %s570_s29 }
  0x60   :  { %v453_v15 = vld [vmem:[#allocation8 + $0x28] sm:$0xff]   ;;  %v454_v16 = vld [vmem:[#allocation8 + $0x30] sm:$0xff]   ;;  %v455_v17 = vld [vmem:[#allocation8 + $0x38] sm:$0xff]  }
  0x61   :  { %v350_v18 = vld [vmem:[#allocation7] ss:$0 sm:$0xff]  ;;  %v360_v36 = vld [vmem:[#allocation10] ss:$0 sm:$0xff]  ;;  %p577_p1 = por %p576_p0, %p575_p13 }
  0x62   :  { %390 = vmatpush3.bf16.msra.mxu0 %v440_v2  ;;  %410 = vmatpush3.bf16.msra.mxu1 %v449_v6 }
  0x63   :  { %391 = vmatprep.subr.bf16.mxu0 %v607_v0  ;;  %411 = vmatprep.subr.bf16.mxu1 %v607_v0  ;;  %p578_p2 = pnand %p577_p1, %p571_p12 }
  0x66   :  { %392 = vmatpush3.bf16.msra.mxu0 %v441_v3  ;;  %412 = vmatpush3.bf16.msra.mxu1 %v450_v12 }
  0x67   :  { %393 = vmatprep.subr.bf16.mxu0 %v607_v0  ;;  %413 = vmatprep.subr.bf16.mxu1 %v607_v0 }
  0x6a   :  { %394 = vmatpush3.bf16.msra.mxu0 %v442_v5  ;;  %414 = vmatpush3.bf16.msra.mxu1 %v451_v13 }
  0x6b   :  { %395 = vmatprep.subr.bf16.mxu0 %v607_v0  ;;  %415 = vmatprep.subr.bf16.mxu1 %v607_v0 }
  0x6e   :  { %396 = vmatpush3.bf16.msra.mxu0 %v443_v7  ;;  %416 = vmatpush3.bf16.msra.mxu1 %v452_v14 }
  0x6f   :  { %397 = vmatprep.subr.bf16.mxu0 %v607_v0  ;;  %417 = vmatprep.subr.bf16.mxu1 %v607_v0 }
  0x72   :  { %398 = vmatpush3.bf16.msra.mxu0 %v444_v8  ;;  %418 = vmatpush3.bf16.msra.mxu1 %v453_v15 }
  0x73   :  { %399 = vmatprep.subr.bf16.mxu0 %v607_v0  ;;  %419 = vmatprep.subr.bf16.mxu1 %v607_v0 }
  0x76   :  { %400 = vmatpush3.bf16.msra.mxu0 %v445_v9  ;;  %420 = vmatpush3.bf16.msra.mxu1 %v454_v16 }
  0x77   :  { %401 = vmatprep.subr.bf16.mxu0 %v607_v0  ;;  %421 = vmatprep.subr.bf16.mxu1 %v607_v0 }
  0x7a   :  { %402 = vmatpush3.bf16.msra.mxu0 %v446_v10  ;;  %422 = vmatpush3.bf16.msra.mxu1 %v455_v17 }
  0x7d   :  { %404 = vmatmul.mubr.bf16.vlgmr.msra.gmra.mrb[0].mxu0 %v447_v11 }
 0x150   :  { %v199_v19 = vpop.f32.mrb[0].mxu0 }
 0x151   :  { %v200_v20 = vadd.f32 %v350_v18, %v199_v19  ;;  %v405_v21 = vpop.f32.mrb[1].mxu0 }
 0x152   :  { %v202_v22 = vpop.f32.mrb[2].mxu0 }
 0x153   :  { %v208_v23 = vmul.f32 0.70710677, %v200_v20  ;;  %v203_v24 = vadd.f32 %v350_v18, %v202_v22  ;;  %v406_v25 = vpop.f32.mrb[3].mxu0  ;;  %v206_v30 = vmul.f32 0.5, %v200_v20 }
 0x155   :  { %456 = verf.f32 %v208_v23  ;;  %v209_v26 = vmul.f32 0.70710677, %v203_v24  ;;  %v207_v31 = vmul.f32 0.5, %v203_v24 }
 0x157   :  { %458 = verf.f32 %v209_v26 }
 0x15f   :  { %v457_v27 = vpop.eup %456 }
 0x160   :  { %v212_v28 = vadd.f32 1.0, %v457_v27 }
 0x161   :  { %v459_v29 = vpop.eup %458 }
 0x162   :  { %v213_v32 = vadd.f32 1.0, %v459_v29  ;;  %v214_v33 = vmul.f32 %v212_v28, %v206_v30 }
 0x164   :  { %v215_v34 = vmul.f32 %v213_v32, %v207_v31 }
 0x166   :  { %v216_v35 = vpack.c.bf16 %v215_v34, %v214_v33 }
 0x168   :  { %424 = vmatmul.mubr.bf16.vlgmr.msra.gmra.mrb[0].mxu1 %v216_v35 }
 0x23b   :  { %v322_v37 = vpop.f32.mrb[0].mxu1 }
 0x23c   :  { %v323_v38 = vadd.f32 %v360_v36, %v322_v37  ;;  %v425_v39 = vpop.f32.mrb[1].mxu1 }
 0x23d   :  { %v325_v40 = vpop.f32.mrb[2].mxu1 }
 0x23e   :  { %329 = vst [vmem:[#allocation11] sm:$0xff] %v323_v38  ;;  %v326_v41 = vadd.f32 %v360_v36, %v325_v40  ;;  %v426_v42 = vpop.f32.mrb[3].mxu1 }
 0x240   :  { %330 = vst [vmem:[#allocation11 + $0x8] sm:$0xff] %v326_v41 }
 0x241   :  { %581 = shalt.err (!%p578_p2)
}
 0x242   :  { %s582_s7 = scalar_lea.hbm %s735_s5, 256 }
 0x243   :  { %p583_p3 = scmp.ne.s32.totalorder %s735_s5, %s582_s7  ;;  %p586_p4 = scmp.lt.u32.totalorder %s582_s7, %s735_s5 }
 0x245   :  { %p588_p5 = pnand %p586_p4, %p583_p3 }
 0x247   :  { %591 = shalt.err (!%p588_p5)
}
 0x248   :  { %s610_s12 = smov 128   ;;  %s611_s13 = smov 8  }
 0x249   :  { %342 = dma.vmem_to_hbm [thread:$0]  %s337_s28, 256, %s735_s5, [#allocation4], %s610_s12, %s610_s12, %s611_s13  }
 0x24a   :  { %598 = dma.done.wait [#allocation4], 256  }
 0x24b   :  { %599 = vsyncadd [#allocation4], 4294967040 }
 0x24c   :  { %346 = vsyncpa [#allocation3], 1 }
 0x24d   :  { %347 = vsyncpa [#allocation6], 1 }
 0x24e   :  { %348 = vsyncpa [#allocation9], 1 }
 0x24f   :  { %349 = vsyncpa [#allocation4], 1 }

</bundles_post_ra>
